<compile_context>
chip_gen: v6e
topology: v6e:2x2x1
jax: 0.10.0
libtpu: 0.0.40
codegen_flags: <defaults>
</compile_context>

<pallas_src>
import jax
import jax.numpy as jnp
from jax import lax
from jax.experimental import pallas as pl
from jax.experimental.pallas import tpu as pltpu


# ---------------------------------------------------------------------------
# Host-side (tiny) operator construction
# ---------------------------------------------------------------------------

def _bilinear_matrix(out_size: int, in_size: int) -> jnp.ndarray:
    """Bilinear (align_corners=False) interpolation matrix of shape (out_size, in_size)."""
    i = jnp.arange(out_size, dtype=jnp.float32)
    src = (i + 0.5) * (in_size / out_size) - 0.5
    src = jnp.clip(src, 0.0, in_size - 1)
    lo = jnp.floor(src).astype(jnp.int32)
    hi = jnp.minimum(lo + 1, in_size - 1)
    frac = src - lo.astype(jnp.float32)
    rows = jnp.arange(out_size)
    w = jnp.zeros((out_size, in_size), jnp.float32)
    w = w.at[rows, lo].add(1.0 - frac)
    w = w.at[rows, hi].add(frac)
    return w


def _selection_matrix(crop: int, src_size: int, offset, pad: int) -> jnp.ndarray:
    """One-hot crop selection (crop, src_size); rows falling in the zero-pad border are all-zero."""
    rows = jnp.arange(crop, dtype=jnp.int32)
    src = offset + rows - pad                                   # (crop,)
    cols = jnp.arange(src_size, dtype=jnp.int32)
    return (src[:, None] == cols[None, :]).astype(jnp.float32)  # out-of-range -> zero row


# ---------------------------------------------------------------------------
# Generation-aware VMEM budgeting & plane-batch selection
# ---------------------------------------------------------------------------

def _vmem_budget_and_limit():
    """VMEM budget (for picking B) and vmem_limit_bytes, derived from the TPU generation."""
    try:
        cap = pltpu.get_tpu_info().vmem_capacity_bytes
    except Exception:                                  # fallback if the query is unavailable
        cap = 64 * 1024 * 1024                         # conservative: v7x per-core VMEM
    budget = min(cap // 2, 48 * 1024 * 1024)           # ~32 MiB on v7x, 48 MiB on v5e/v6e
    limit = min((cap * 3) // 4, 96 * 1024 * 1024)      # ~48 MiB on v7x, 96 MiB on v5e/v6e
    return budget, limit


def _plane_batch_fused(nc: int, hw: int, cc: int, x_bytes: int, o_bytes: int,
                       budget: int) -> int:
    """Plane batch for the fused-kron path (2-D blocks: B must be 8-aligned or == nc)."""
    if nc <= 8:
        return nc                                      # single full block (sublane rule OK)
    kt_bytes = 4 * hw * cc                             # single-buffered weight operand
    per_plane = 2 * hw * x_bytes + 2 * cc * o_bytes    # double-buffered in/out blocks
    b_vmem = max(8, ((budget - kt_bytes) // per_plane) // 8 * 8)
    b_steps = max(8, (pl.cdiv(nc, 4) + 7) // 8 * 8)    # aim for >= ~4 grid steps
    b_full = max(8, (nc // 8) * 8)
    return min(b_vmem, b_steps, b_full)


def _plane_batch_perplane(nc: int, H: int, W: int, crop: int, x_bytes: int,
                          o_bytes: int, budget: int) -> int:
    """Plane batch for the per-plane path (3-D blocks: any B >= 1)."""
    per_plane = (2 * H * W * x_bytes                   # double-buffered input block
                 + 2 * crop * crop * o_bytes           # double-buffered output block
                 + 4 * crop * W)                       # f32 VMEM scratch (intermediate)
    w_bytes = 4 * crop * (H + W)                       # single-buffered weight operands
    b_vmem = max(1, (budget - w_bytes) // per_plane)
    b_steps = max(1, pl.cdiv(nc, 4))                   # >= ~4 grid steps (2 TCs + pipelining)
    return max(1, min(b_vmem, b_steps, nc))


# ---------------------------------------------------------------------------
# Kernels
# ---------------------------------------------------------------------------

def _fused_kernel(x_ref, kt_ref, o_ref):
    # x_ref : (B, H*W)            B image planes, natural row-major layout
    # kt_ref: (H*W, crop*crop)    kron(Wy_eff, Wx_eff)^T  (resize + crop folded)
    # o_ref : (B, crop*crop)
    o_ref[...] = jnp.dot(x_ref[...], kt_ref[...],
                         preferred_element_type=jnp.float32).astype(o_ref.dtype)


def _perplane_kernel(x_ref, wy_ref, wx_ref, o_ref, r_ref):
    # x_ref : (B, H, W)   wy_ref: (crop, H)   wx_ref: (crop, W)
    # o_ref : (B, crop, crop)
    # r_ref : (B, crop, W) f32 VMEM scratch for the row-resized intermediate
    b = x_ref.shape[0]
    wy_b = jnp.broadcast_to(wy_ref[...], (b,) + wy_ref.shape)
    wx_b = jnp.broadcast_to(wx_ref[...], (b,) + wx_ref.shape)
    # Row resize+crop: (B, crop, H) @ (B, H, W) -> (B, crop, W), staged in VMEM scratch.
    r_ref[...] = jnp.einsum('bch,bhw->bcw', wy_b, x_ref[...],
                            preferred_element_type=jnp.float32)
    # Column resize+crop: contract W (last dims of both operands) -> (B, crop, crop).
    o_ref[...] = jnp.einsum('bcw,bdw->bcd', r_ref[...], wx_b,
                            preferred_element_type=jnp.float32).astype(o_ref.dtype)


# ---------------------------------------------------------------------------
# Wrapper (forward pass of CroppingModule)
# ---------------------------------------------------------------------------

def cropping_module(x: jnp.ndarray, key, crop_size: int, downsample_size: int = None, *,
                    use_bf16: bool = False, fused: bool = None):
    """x: (N, C, H, W) -> (N, C, crop, crop), plus the sampled (oy, ox) crop offsets."""
    N, C, H, W = x.shape
    NC = N * C
    crop = crop_size

    if downsample_size is not None:
        ds_h = ds_w = downsample_size
    else:
        ds_h, ds_w = H, W

    # pad_if_needed semantics (fill=0, pads both sides, like torchvision RandomCrop).
    pad_h = max(0, crop - ds_h)
    pad_w = max(0, crop - ds_w)

    k1, k2 = jax.random.split(key)
    oy = jax.random.randint(k1, (), 0, ds_h + 2 * pad_h - crop + 1, dtype=jnp.int32)
    ox = jax.random.randint(k2, (), 0, ds_w + 2 * pad_w - crop + 1, dtype=jnp.int32)

    # Fold the crop into the resize matrices (one-hot selection -> exact).
    sy = _selection_matrix(crop, ds_h, oy, pad_h)               # (crop, ds_h)
    sx = _selection_matrix(crop, ds_w, ox, pad_w)               # (crop, ds_w)
    if downsample_size is not None:
        wy_eff = sy @ _bilinear_matrix(ds_h, H)                 # (crop, H)
        wx_eff = sx @ _bilinear_matrix(ds_w, W)                 # (crop, W)
    else:
        wy_eff, wx_eff = sy, sx                                 # crop only, no resize

    budget, vmem_limit = _vmem_budget_and_limit()
    x_bytes = 2 if use_bf16 else 4
    o_bytes = x.dtype.itemsize
    HW, CC = H * W, crop * crop

    if fused is None:
        # Fused kron only while its (H*W, crop^2) operand stays modest (it scales as
        # crop^2 * H * W and stays resident in VMEM); otherwise per-plane contractions.
        fused = 4 * HW * CC <= min(budget // 4, 4 * 1024 * 1024)

    compiler_params = pltpu.CompilerParams(
        dimension_semantics=("parallel",),        # plane-batch axis shards across TCs (v7x)
        vmem_limit_bytes=vmem_limit,
    )

    if fused:
        kt = jnp.kron(wy_eff, wx_eff).T                         # (H*W, crop*crop)
        x2 = x.reshape(NC, HW)                                  # contiguous reshape -> free
        if use_bf16:
            x2, kt = x2.astype(jnp.bfloat16), kt.astype(jnp.bfloat16)
        B = _plane_batch_fused(NC, HW, CC, x_bytes, o_bytes, budget)
        out2 = pl.pallas_call(
            _fused_kernel,
            out_shape=jax.ShapeDtypeStruct((NC, CC), x.dtype),
            grid_spec=pltpu.PrefetchScalarGridSpec(
                num_scalar_prefetch=0,
                grid=(pl.cdiv(NC, B),),                         # ragged tail = partial block
                in_specs=[
                    pl.BlockSpec((B, HW), lambda i: (i, 0)),
                    pl.BlockSpec((HW, CC), lambda i: (0, 0),
                                 pipeline_mode=pl.Buffered(1)),  # grid-invariant weight
                ],
                out_specs=pl.BlockSpec((B, CC), lambda i: (i, 0)),
            ),
            compiler_params=compiler_params,
        )(x2, kt)
        out = out2.reshape(N, C, crop, crop)                    # contiguous reshape -> free
    else:
        x3 = x.reshape(NC, H, W)                                # contiguous reshape -> free
        wy_c, wx_c = wy_eff, wx_eff
        if use_bf16:
            x3 = x3.astype(jnp.bfloat16)
            wy_c, wx_c = wy_c.astype(jnp.bfloat16), wx_c.astype(jnp.bfloat16)
        B = _plane_batch_perplane(NC, H, W, crop, x_bytes, o_bytes, budget)
        out3 = pl.pallas_call(
            _perplane_kernel,
            out_shape=jax.ShapeDtypeStruct((NC, crop, crop), x.dtype),
            grid_spec=pltpu.PrefetchScalarGridSpec(
                num_scalar_prefetch=0,
                grid=(pl.cdiv(NC, B),),                         # ragged tail = partial block
                in_specs=[
                    pl.BlockSpec((B, H, W), lambda i: (i, 0, 0)),
                    pl.BlockSpec((crop, H), lambda i: (0, 0),
                                 pipeline_mode=pl.Buffered(1)),  # grid-invariant weights
                    pl.BlockSpec((crop, W), lambda i: (0, 0),
                                 pipeline_mode=pl.Buffered(1)),
                ],
                out_specs=pl.BlockSpec((B, crop, crop), lambda i: (i, 0, 0)),
                scratch_shapes=[pltpu.VMEM((B, crop, W), jnp.float32)],
            ),
            compiler_params=compiler_params,
        )(x3, wy_c, wx_c)
        out = out3.reshape(N, C, crop, crop)

    return out, (oy, ox)


# ---------------------------------------------------------------------------
# Pure-JAX reference & self-test
# ---------------------------------------------------------------------------

def _reference(x, oy, ox, crop, downsample_size):
    """Pure-JAX reference: bilinear resize (same matrices), zero-pad, dynamic slice."""
    N, C, H, W = x.shape
    xf = x.astype(jnp.float32)
    if downsample_size is not None:
        wy = _bilinear_matrix(downsample_size, H)
        wx = _bilinear_matrix(downsample_size, W)
        r = jnp.einsum('ah,nchw->ncaw', wy, xf)
        r = jnp.einsum('bw,ncaw->ncab', wx, r)
        ds_h = ds_w = downsample_size
    else:
        r = xf
        ds_h, ds_w = H, W
    pad_h = max(0, crop - ds_h)
    pad_w = max(0, crop - ds_w)
    r = jnp.pad(r, ((0, 0), (0, 0), (pad_h, pad_h), (pad_w, pad_w)))
    out = lax.dynamic_slice(r, (0, 0, oy, ox), (N, C, crop, crop))
    return out.astype(x.dtype)


if __name__ == "__main__":
    key = jax.random.PRNGKey(0)
    kx, kc1, kc2, kc3, kc4 = jax.random.split(key, 5)

    N, C, H, W = 2, 4, 16, 16
    crop_size, downsample_size = 8, 12

    x = jax.random.normal(kx, (N, C, H, W), dtype=jnp.float32)

    # 1) Downsample + random crop (fused-kron path, auto-selected).
    out, (oy, ox) = cropping_module(x, kc1, crop_size, downsample_size)
    out = jax.block_until_ready(out)
    ref = _reference(x, oy, ox, crop_size, downsample_size)
    assert out.shape == (N, C, crop_size, crop_size), out.shape
    assert jnp.allclose(out, ref, atol=1e-5, rtol=1e-5), "mismatch (fused, downsample)"

    # 2) Crop-only fast path (downsample_size=None).
    out2, (oy2, ox2) = cropping_module(x, kc2, crop_size, None)
    out2 = jax.block_until_ready(out2)
    ref2 = _reference(x, oy2, ox2, crop_size, None)
    assert out2.shape == (N, C, crop_size, crop_size), out2.shape
    assert jnp.allclose(out2, ref2, atol=1e-5, rtol=1e-5), "mismatch (fused, crop only)"

    # 3) Per-plane path (used automatically for large images where kron(Wy,Wx) is huge).
    out3, (oy3, ox3) = cropping_module(x, kc3, crop_size, downsample_size, fused=False)
    out3 = jax.block_until_ready(out3)
    ref3 = _reference(x, oy3, ox3, crop_size, downsample_size)
    assert out3.shape == (N, C, crop_size, crop_size), out3.shape
    assert jnp.allclose(out3, ref3, atol=1e-5, rtol=1e-5), "mismatch (per-plane)"

    # 4) Optional bf16 streaming (opt-in; f32 accumulation; looser tolerance).
    out4, (oy4, ox4) = cropping_module(x, kc4, crop_size, downsample_size, use_bf16=True)
    out4 = jax.block_until_ready(out4)
    ref4 = _reference(x, oy4, ox4, crop_size, downsample_size)
    assert out4.shape == (N, C, crop_size, crop_size), out4.shape
    assert jnp.allclose(out4, ref4, atol=1e-1, rtol=1e-1), "mismatch (bf16)"

    print("KERNEL_OK")
</pallas_src>

<mosaic_0001>
module attributes {stable_mosaic.version = 11 : i64} {
  func.func @_fused_kernel(%arg0: i32, %arg1: memref<8x256xf32, #tpu.memory_space<vmem>>, %arg2: memref<256x64xf32, #tpu.memory_space<vmem>>, %arg3: memref<8x64xf32, #tpu.memory_space<vmem>>) attributes {dimension_semantics = [#tpu.dimension_semantics<parallel>], iteration_bounds = array<i64: 1>, scalar_prefetch = 0 : i64, scratch_operands = 0 : i64, tpu.core_type = #tpu.core_type<tc>, window_params = [{transform_indices = @transform_0, window_bounds = array<i64: 8, 256>}, {pipeline_mode = #tpu.pipeline_mode<synchronous>, transform_indices = @transform_1, window_bounds = array<i64: 256, 64>}, {transform_indices = @transform_2, window_bounds = array<i64: 8, 64>}]} {
    %c0 = arith.constant 0 : index
    %c0_0 = arith.constant 0 : index
    %0 = vector.load %arg1[%c0, %c0_0] : memref<8x256xf32, #tpu.memory_space<vmem>>, vector<8x256xf32>
    %c0_1 = arith.constant 0 : index
    %c0_2 = arith.constant 0 : index
    %1 = vector.load %arg2[%c0_1, %c0_2] : memref<256x64xf32, #tpu.memory_space<vmem>>, vector<256x64xf32>
    %cst = arith.constant dense<0.000000e+00> : vector<8x64xf32>
    %2 = tpu.matmul %0, %1, %cst {dimension_numbers = #tpu.dot_dimension_numbers<[1], [0], [0], [1], [0, 0, 1, 1], [], []>} : vector<8x256xf32>, vector<256x64xf32>, vector<8x64xf32> -> vector<8x64xf32>
    %c0_3 = arith.constant 0 : index
    %c0_4 = arith.constant 0 : index
    %3 = vector.load %arg3[%c0_3, %c0_4] : memref<8x64xf32, #tpu.memory_space<vmem>>, vector<8x64xf32>
    tpu.vector_store %arg3[%c0_3, %c0_4], %2 {strides = array<i32>} : memref<8x64xf32, #tpu.memory_space<vmem>>, vector<8x64xf32>,
    return
  }
  func.func @transform_0(%arg0: i32) -> (i32, i32) {
    %c0_i32 = arith.constant 0 : i32
    %c0_i32_0 = arith.constant 0 : i32
    return %arg0, %c0_i32 : i32, i32
  }
  func.func @transform_1(%arg0: i32) -> (i32, i32) {
    %c0_i32 = arith.constant 0 : i32
    %c0_i32_0 = arith.constant 0 : i32
    %c0_i32_1 = arith.constant 0 : i32
    return %c0_i32, %c0_i32_0 : i32, i32
  }
  func.func @transform_2(%arg0: i32) -> (i32, i32) {
    %c0_i32 = arith.constant 0 : i32
    %c0_i32_0 = arith.constant 0 : i32
    return %arg0, %c0_i32 : i32, i32
  }
}

</mosaic_0001>

<bundles_post_ra>
// kernel: tpu_custom_call.1
= control target key start
LH: loop header
LB: loop body
LE: loop exit
PB: predicated region body
PF: predicated region fallthrough
CT: control target
= control target key end

     0   :  { %s311_s0 = inlined_call_operand.vmem [shape: f32[8,256], index: 0, kind: input, shape index: {}]   ;;  %s312_s1 = inlined_call_operand.vmem [shape: f32[256,64], index: 1, kind: input, shape index: {}]   ;;  %s313_s2 = inlined_call_operand.hbm [shape: f32[8,64], index: 2, kind: output, shape index: {}]  }
   0x1   :  { %v45_v0 = vld [vmem:[%s312_s1 + $0xf8] sm:$0xff]  ;;  %v44_v2 = vld [vmem:[%s312_s1 + $0xf0] sm:$0xff]  ;;  %v43_v4 = vld [vmem:[%s312_s1 + $0xe8] sm:$0xff] }
   0x2   :  { %v29_v1 = vld [vmem:[%s312_s1 + $0x78] sm:$0xff]  ;;  %132 = vmatprep.subr.mxu0 %v45_v0  ;;  %v28_v3 = vld [vmem:[%s312_s1 + $0x70] sm:$0xff]  ;;  %v27_v5 = vld [vmem:[%s312_s1 + $0x68] sm:$0xff] }
   0x3   :  { %133 = vmatpush3.msra.mxu0 %v29_v1  ;;  %v42_v6 = vld [vmem:[%s312_s1 + $0xe0] sm:$0xff]  ;;  %v41_v8 = vld [vmem:[%s312_s1 + $0xd8] sm:$0xff]  ;;  %v40_v10 = vld [vmem:[%s312_s1 + $0xd0] sm:$0xff] }
   0x4   :  { %134 = vmatprep.subr.mxu0 %v44_v2  ;;  %v26_v7 = vld [vmem:[%s312_s1 + $0x60] sm:$0xff]  ;;  %v25_v9 = vld [vmem:[%s312_s1 + $0x58] sm:$0xff]  ;;  %v24_v11 = vld [vmem:[%s312_s1 + $0x50] sm:$0xff] }
   0x5   :  { %135 = vmatpush3.msra.mxu0 %v28_v3  ;;  %v39_v12 = vld [vmem:[%s312_s1 + $0xc8] sm:$0xff] }
   0x6   :  { %136 = vmatprep.subr.mxu0 %v43_v4  ;;  %v13_v13 = vld [vmem:[%s311_s0 + $0x8] sm:$0xff] }
   0x7   :  { %137 = vmatpush3.msra.mxu0 %v27_v5  ;;  %v23_v14 = vld [vmem:[%s312_s1 + $0x48] sm:$0xff]  ;;  %110 = vmatprep.mubr.f32.mxu0 %v13_v13 }
   0x8   :  { %138 = vmatprep.subr.mxu0 %v42_v6 }
   0x9   :  { %139 = vmatpush3.msra.mxu0 %v26_v7 }
   0xa   :  { %140 = vmatprep.subr.mxu0 %v41_v8 }
   0xb   :  { %141 = vmatpush3.msra.mxu0 %v25_v9 }
   0xc   :  { %142 = vmatprep.subr.mxu0 %v40_v10 }
   0xd   :  { %7 = vsyncpa [#allocation3], 0  ;;  %143 = vmatpush3.msra.mxu0 %v24_v11  ;;  %v38_v15 = vld [vmem:[%s312_s1 + $0xc0] sm:$0xff]  ;;  %v37_v17 = vld [vmem:[%s312_s1 + $0xb8] sm:$0xff]  ;;  %s190_s21 = smov [#allocation2]   ;;  %vm116_vm0 = vcmask 523264  }
   0xe   :  { %144 = vmatprep.subr.mxu0 %v39_v12  ;;  %v22_v16 = vld [vmem:[%s312_s1 + $0x40] sm:$0xff]  ;;  %v21_v18 = vld [vmem:[%s312_s1 + $0x38] sm:$0xff]  ;;  %v36_v19 = vld [vmem:[%s312_s1 + $0xb0] sm:$0xff]  ;;  %s124_s22 = sshll.u32 %s190_s21, 4  ;;  %s125_s22 = int_to_ptr.vmem [resolvable:$true] %s124_s22 }
   0xf   :  { %145 = vmatpush3.msra.mxu0 %v23_v14  ;;  %v20_v20 = vld [vmem:[%s312_s1 + $0x30] sm:$0xff]  ;;  %v35_v21 = vld [vmem:[%s312_s1 + $0xa8] sm:$0xff]  ;;  %v34_v23 = vld [vmem:[%s312_s1 + $0xa0] sm:$0xff]  ;;  %s168_s23 = scalar_lea.vmem %s125_s22, 128  ;;  %p173_p1 = scmp.lt.s32.totalorder %s125_s22, %s125_s22 }
  0x10   :  { %146 = vmatprep.subr.mxu0 %v38_v15  ;;  %v19_v22 = vld [vmem:[%s312_s1 + $0x28] sm:$0xff]  ;;  %v18_v24 = vld [vmem:[%s312_s1 + $0x20] sm:$0xff]  ;;  %v33_v25 = vld [vmem:[%s312_s1 + $0x98] sm:$0xff]  ;;  %p169_p0 = scmp.ne.s32.totalorder %s125_s22, %s168_s23  ;;  %p174_p2 = scmp.lt.s32.totalorder %s168_s23, %s168_s23 }
  0x11   :  { %147 = vmatpush3.msra.mxu0 %v22_v16  ;;  %v17_v26 = vld [vmem:[%s312_s1 + $0x18] sm:$0xff]  ;;  %v32_v27 = vld [vmem:[%s312_s1 + $0x90] sm:$0xff]  ;;  %v31_v29 = vld [vmem:[%s312_s1 + $0x88] sm:$0xff] }
  0x12   :  { %148 = vmatprep.subr.mxu0 %v37_v17  ;;  %v16_v28 = vld [vmem:[%s312_s1 + $0x10] sm:$0xff]  ;;  %v15_v30 = vld [vmem:[%s312_s1 + $0x8] sm:$0xff]  ;;  %v30_v31 = vld [vmem:[%s312_s1 + $0x80] sm:$0xff]  ;;  %p175_p3 = por %p174_p2, %p173_p1 }
  0x13   :  { %149 = vmatpush3.msra.mxu0 %v21_v18  ;;  %v14_v32 = vld [vmem:[%s312_s1] sm:$0xff] }
  0x14   :  { %150 = vmatprep.subr.mxu0 %v36_v19  ;;  %v12_v33 = vld [vmem:[%s311_s0] sm:$0xff]  ;;  %p176_p4 = pnand %p175_p3, %p169_p0 }
  0x15   :  { %151 = vmatpush3.msra.mxu0 %v20_v20 }
  0x16   :  { %152 = vmatprep.subr.mxu0 %v35_v21 }
  0x17   :  { %153 = vmatpush3.msra.mxu0 %v19_v22 }
  0x18   :  { %154 = vmatprep.subr.mxu0 %v34_v23 }
  0x19   :  { %155 = vmatpush3.msra.mxu0 %v18_v24 }
  0x1a   :  { %156 = vmatprep.subr.mxu0 %v33_v25 }
  0x1b   :  { %157 = vmatpush3.msra.mxu0 %v17_v26 }
  0x1c   :  { %158 = vmatprep.subr.mxu0 %v32_v27 }
  0x1d   :  { %159 = vmatpush3.msra.mxu0 %v16_v28 }
  0x1e   :  { %160 = vmatprep.subr.mxu0 %v31_v29 }
  0x1f   :  { %161 = vmatpush3.msra.mxu0 %v15_v30 }
  0x20   :  { %162 = vmatprep.subr.mxu0 %v30_v31 }
  0x21   :  { %163 = vmatpush3.msra.mxu0 %v14_v32 }
  0x22   :  { %111 = vmatmul.mubr.f32.vlgmr.msra.gmra.mxu0 %v12_v33 }
  0xe2   :  { %v164_v34 = vpop.f32.mrf.mxu0 }
  0xe4   :  { %v165_v35 = vpop.f32.mrf.mxu0 }
  0xe5   :  { %v166_v36 = vadd.f32 %v165_v35, %v164_v34 }
  0xe7   :  { %117 = vst.msk [vmem:[#allocation2] sm:$0xff] %vm116_vm0, %v166_v36 }
  0xe8   :  { %179 = shalt.err (!%p176_p4)
}
  0xe9   :  { %127 = dma.vmem_to_hbm [thread:$0]  %s125_s22, 128, %s313_s2, [#allocation3]  }
  0xea   :  { %188 = dma.done.wait [#allocation3], 128  }
  0xeb   :  { %189 = vsyncadd [#allocation3], 4294967168 }
  0xec   :  { %131 = vsyncpa [#allocation3], 1 }

</bundles_post_ra>
